<compile_context>
chip_gen: v7x
topology: tpu7x:2x2x1
jax: 0.10.0
libtpu: 0.0.40
codegen_flags: <defaults>
</compile_context>

<pallas_src>
import math

import jax
import jax.numpy as jnp
from jax.experimental import pallas as pl
from jax.experimental.pallas import tpu as pltpu


def _discriminator_kernel(xT_ref, xtT_ref, w1a_ref, w1b_ref, b1_ref, w2_ref,
                          b2_ref, o_ref):
    # First linear, transposed layout (batch on lanes):
    #   h.T = W1a @ x.T + W1b @ x_tild.T + b1        -> (4D, TB), f32 accumulate
    h = jnp.dot(w1a_ref[...], xT_ref[...], preferred_element_type=jnp.float32)
    h = h + jnp.dot(w1b_ref[...], xtT_ref[...],
                    preferred_element_type=jnp.float32)
    h = h + b1_ref[...]                  # (4D, 1) broadcast over lanes
    h = jnp.maximum(h, 0.0)              # ReLU

    # TODO(synk): Dropout(0.5) is identity in eval mode; training-mode masking
    # would use pltpu.prng_seed + pltpu.prng_random_bits.

    # Second linear as VPU multiply + sublane reduction (avoids an N=1 MXU
    # matmul). Result is a lane-dense (1, TB) row.
    p = jnp.sum(h * w2_ref[...], axis=0, keepdims=True) + b2_ref[0, 0]
    o_ref[...] = p.astype(o_ref.dtype)


def discriminator_forward(x, x_tild, w1, b1, w2, b2, *, block_b=256):
    """x, x_tild: (B, D) f32.

    Weights in PyTorch orientation:
      w1: (4D, 2D), b1: (4D,), w2: (1, 4D), b2: (1,)
    Returns p: (B,) f32.
    """
    B, D = x.shape
    H = 4 * D

    # Split W1 so no concat is needed; cast the MXU operands to bf16.
    w1a = w1[:, :D].astype(jnp.bfloat16)            # (4D, D)  (acts on x)
    w1b = w1[:, D:].astype(jnp.bfloat16)            # (4D, D)  (acts on x_tild)
    b1_col = b1.reshape(H, 1).astype(jnp.float32)   # (4D, 1)
    w2_col = w2.reshape(H, 1).astype(jnp.float32)   # (4D, 1)
    b2_s = b2.reshape(1, 1).astype(jnp.float32)     # (1, 1) scalar -> SMEM

    tb = block_b
    g = pl.cdiv(B, tb)
    b_pad = g * tb

    def _prep(a):
        aT = a.T.astype(jnp.bfloat16)               # (D, B), batch on lanes
        if b_pad != B:
            aT = jnp.pad(aT, ((0, 0), (0, b_pad - B)))
        return aT

    xT = _prep(x)
    xtT = _prep(x_tild)

    out = pl.pallas_call(
        _discriminator_kernel,
        out_shape=jax.ShapeDtypeStruct((1, b_pad), jnp.float32),
        grid=(g,),
        in_specs=[
            pl.BlockSpec((D, tb), lambda i: (0, i)),     # x.T tile
            pl.BlockSpec((D, tb), lambda i: (0, i)),     # x_tild.T tile
            pl.BlockSpec((H, D), lambda i: (0, 0)),      # W1a (resident)
            pl.BlockSpec((H, D), lambda i: (0, 0)),      # W1b (resident)
            pl.BlockSpec((H, 1), lambda i: (0, 0)),      # b1  (resident)
            pl.BlockSpec((H, 1), lambda i: (0, 0)),      # w2  (resident)
            pl.BlockSpec(memory_space=pltpu.MemorySpace.SMEM),  # b2 scalar
        ],
        out_specs=pl.BlockSpec((1, tb), lambda i: (0, i)),
        compiler_params=pltpu.CompilerParams(
            dimension_semantics=("parallel",),  # v7x: split batch tiles across TCs
        ),
    )(xT, xtT, w1a, w1b, b1_col, w2_col, b2_s)

    # p.view((-1,)): drop padding, flatten.
    return out.reshape(-1)[:B]


def _xavier_uniform(key, out_features, in_features, dtype=jnp.float32):
    bound = math.sqrt(6.0 / (in_features + out_features))
    # PyTorch orientation: (out, in)
    return jax.random.uniform(key, (out_features, in_features),
                              minval=-bound, maxval=bound, dtype=dtype)


def init_params(key, input_size):
    k1, k2, k3, k4 = jax.random.split(key, 4)
    D = input_size
    w1 = _xavier_uniform(k1, 4 * D, 2 * D)                       # (4D, 2D)
    b1 = jax.random.uniform(k2, (4 * D,), minval=-1.0, maxval=1.0,
                            dtype=jnp.float32) / math.sqrt(2 * D)  # default Linear bias
    w2 = _xavier_uniform(k3, 1, 4 * D)                           # (1, 4D)
    b2 = jax.random.uniform(k4, (1,), minval=-1.0, maxval=1.0,
                            dtype=jnp.float32) / math.sqrt(4 * D)
    return w1, b1, w2, b2


if __name__ == "__main__":
    input_size = 32
    batch = 8

    key = jax.random.PRNGKey(0)
    kx, kxt, kp = jax.random.split(key, 3)

    x = jax.random.normal(kx, (batch, input_size), dtype=jnp.float32)
    x_tild = jax.random.normal(kxt, (batch, input_size), dtype=jnp.float32)
    w1, b1, w2, b2 = init_params(kp, input_size)

    p = discriminator_forward(x, x_tild, w1, b1, w2, b2)
    jax.block_until_ready(p)

    # Reference in plain JAX, with the same bf16 quantization of the MXU
    # operands (f32 accumulate) that the kernel uses.
    xq = x.astype(jnp.bfloat16).astype(jnp.float32)
    xtq = x_tild.astype(jnp.bfloat16).astype(jnp.float32)
    w1q = w1.astype(jnp.bfloat16).astype(jnp.float32)
    x_all = jnp.concatenate([xq, xtq], axis=-1)
    h = jnp.maximum(
        jnp.dot(x_all, w1q.T, precision=jax.lax.Precision.HIGHEST) + b1, 0.0)
    ref = (jnp.dot(h, w2.T, precision=jax.lax.Precision.HIGHEST) + b2).reshape(-1)

    assert p.shape == (batch,)
    assert jnp.allclose(p, ref, atol=1e-3, rtol=1e-3), (p, ref)

    print("KERNEL_OK")
</pallas_src>

<mosaic_0001>
module attributes {stable_mosaic.version = 11 : i64} {
  func.func @_discriminator_kernel(%arg0: i32, %arg1: memref<32x256xbf16, #tpu.memory_space<vmem>>, %arg2: memref<32x256xbf16, #tpu.memory_space<vmem>>, %arg3: memref<128x32xbf16, #tpu.memory_space<vmem>>, %arg4: memref<128x32xbf16, #tpu.memory_space<vmem>>, %arg5: memref<128x1xf32, #tpu.memory_space<vmem>>, %arg6: memref<128x1xf32, #tpu.memory_space<vmem>>, %arg7: memref<1x1xf32, #tpu.memory_space<smem>>, %arg8: memref<1x256xf32, #tpu.memory_space<vmem>>) attributes {dimension_semantics = [#tpu.dimension_semantics<parallel>], iteration_bounds = array<i64: 1>, scalar_prefetch = 0 : i64, scratch_operands = 0 : i64, tpu.core_type = #tpu.core_type<tc>, window_params = [{transform_indices = @transform_0, window_bounds = array<i64: 32, 256>}, {transform_indices = @transform_1, window_bounds = array<i64: 32, 256>}, {pipeline_mode = #tpu.pipeline_mode<synchronous>, transform_indices = @transform_2, window_bounds = array<i64: 128, 32>}, {pipeline_mode = #tpu.pipeline_mode<synchronous>, transform_indices = @transform_3, window_bounds = array<i64: 128, 32>}, {pipeline_mode = #tpu.pipeline_mode<synchronous>, transform_indices = @transform_4, window_bounds = array<i64: 128, 1>}, {pipeline_mode = #tpu.pipeline_mode<synchronous>, transform_indices = @transform_5, window_bounds = array<i64: 128, 1>}, {transform_indices = @transform_6, window_bounds = array<i64: 1, 1>}, {transform_indices = @transform_7, window_bounds = array<i64: 1, 256>}]} {
    %c0 = arith.constant 0 : index
    %c0_0 = arith.constant 0 : index
    %0 = vector.load %arg3[%c0, %c0_0] : memref<128x32xbf16, #tpu.memory_space<vmem>>, vector<128x32xbf16>
    %c0_1 = arith.constant 0 : index
    %c0_2 = arith.constant 0 : index
    %1 = vector.load %arg1[%c0_1, %c0_2] : memref<32x256xbf16, #tpu.memory_space<vmem>>, vector<32x256xbf16>
    %cst = arith.constant dense<0.000000e+00> : vector<128x256xf32>
    %2 = tpu.matmul %0, %1, %cst {dimension_numbers = #tpu.dot_dimension_numbers<[1], [0], [0], [1], [0, 0, 1, 1], [], []>} : vector<128x32xbf16>, vector<32x256xbf16>, vector<128x256xf32> -> vector<128x256xf32>
    %c0_3 = arith.constant 0 : index
    %c0_4 = arith.constant 0 : index
    %3 = vector.load %arg4[%c0_3, %c0_4] : memref<128x32xbf16, #tpu.memory_space<vmem>>, vector<128x32xbf16>
    %c0_5 = arith.constant 0 : index
    %c0_6 = arith.constant 0 : index
    %4 = vector.load %arg2[%c0_5, %c0_6] : memref<32x256xbf16, #tpu.memory_space<vmem>>, vector<32x256xbf16>
    %cst_7 = arith.constant dense<0.000000e+00> : vector<128x256xf32>
    %5 = tpu.matmul %3, %4, %cst_7 {dimension_numbers = #tpu.dot_dimension_numbers<[1], [0], [0], [1], [0, 0, 1, 1], [], []>} : vector<128x32xbf16>, vector<32x256xbf16>, vector<128x256xf32> -> vector<128x256xf32>
    %6 = arith.addf %2, %5 : vector<128x256xf32>
    %c0_8 = arith.constant 0 : index
    %c0_9 = arith.constant 0 : index
    %7 = vector.load %arg5[%c0_8, %c0_9] : memref<128x1xf32, #tpu.memory_space<vmem>>, vector<128x1xf32>
    %8 = vector.broadcast %7 : vector<128x1xf32> to vector<128x256xf32>
    %9 = arith.addf %6, %8 : vector<128x256xf32>
    %cst_10 = arith.constant 0.000000e+00 : f32
    %10 = vector.broadcast %cst_10 : f32 to vector<128x256xf32>
    %11 = arith.maximumf %9, %10 : vector<128x256xf32>
    %c0_11 = arith.constant 0 : index
    %c0_12 = arith.constant 0 : index
    %12 = vector.load %arg6[%c0_11, %c0_12] : memref<128x1xf32, #tpu.memory_space<vmem>>, vector<128x1xf32>
    %13 = vector.broadcast %12 : vector<128x1xf32> to vector<128x256xf32>
    %14 = arith.mulf %11, %13 : vector<128x256xf32>
    %cst_13 = arith.constant dense<0.000000e+00> : vector<256xf32>
    %15 = vector.multi_reduction <add>, %14, %cst_13 [0] : vector<128x256xf32> to vector<256xf32>
    %16 = vector.shape_cast %15 : vector<256xf32> to vector<1x256xf32>
    %c0_14 = arith.constant 0 : index
    %c0_15 = arith.constant 0 : index
    %17 = memref.load %arg7[%c0_14, %c0_15] : memref<1x1xf32, #tpu.memory_space<smem>>
    %18 = vector.broadcast %17 : f32 to vector<1x256xf32>
    %19 = arith.addf %16, %18 : vector<1x256xf32>
    %c0_16 = arith.constant 0 : index
    %c0_17 = arith.constant 0 : index
    %20 = vector.load %arg8[%c0_16, %c0_17] : memref<1x256xf32, #tpu.memory_space<vmem>>, vector<1x256xf32>
    tpu.vector_store %arg8[%c0_16, %c0_17], %19 {strides = array<i32>} : memref<1x256xf32, #tpu.memory_space<vmem>>, vector<1x256xf32>,
    return
  }
  func.func @transform_0(%arg0: i32) -> (i32, i32) {
    %c0_i32 = arith.constant 0 : i32
    %c0_i32_0 = arith.constant 0 : i32
    return %c0_i32, %arg0 : i32, i32
  }
  func.func @transform_1(%arg0: i32) -> (i32, i32) {
    %c0_i32 = arith.constant 0 : i32
    %c0_i32_0 = arith.constant 0 : i32
    return %c0_i32, %arg0 : i32, i32
  }
  func.func @transform_2(%arg0: i32) -> (i32, i32) {
    %c0_i32 = arith.constant 0 : i32
    %c0_i32_0 = arith.constant 0 : i32
    %c0_i32_1 = arith.constant 0 : i32
    return %c0_i32, %c0_i32_0 : i32, i32
  }
  func.func @transform_3(%arg0: i32) -> (i32, i32) {
    %c0_i32 = arith.constant 0 : i32
    %c0_i32_0 = arith.constant 0 : i32
    %c0_i32_1 = arith.constant 0 : i32
    return %c0_i32, %c0_i32_0 : i32, i32
  }
  func.func @transform_4(%arg0: i32) -> (i32, i32) {
    %c0_i32 = arith.constant 0 : i32
    %c0_i32_0 = arith.constant 0 : i32
    %c0_i32_1 = arith.constant 0 : i32
    return %c0_i32, %c0_i32_0 : i32, i32
  }
  func.func @transform_5(%arg0: i32) -> (i32, i32) {
    %c0_i32 = arith.constant 0 : i32
    %c0_i32_0 = arith.constant 0 : i32
    %c0_i32_1 = arith.constant 0 : i32
    return %c0_i32, %c0_i32_0 : i32, i32
  }
  func.func @transform_6(%arg0: i32) -> (i32, i32) {
    %c0_i32 = arith.constant 0 : i32
    %c0_i32_0 = arith.constant 0 : i32
    %c0_i32_1 = arith.constant 0 : i32
    return %c0_i32, %c0_i32_0 : i32, i32
  }
  func.func @transform_7(%arg0: i32) -> (i32, i32) {
    %c0_i32 = arith.constant 0 : i32
    %c0_i32_0 = arith.constant 0 : i32
    return %c0_i32, %arg0 : i32, i32
  }
}

</mosaic_0001>

<bundles_post_ra>
// kernel: tpu_custom_call.1
= control target key start
LH: loop header
LB: loop body
LE: loop exit
PB: predicated region body
PF: predicated region fallthrough
CT: control target
= control target key end

     0   :  { %v964_v2 = vmov 0   ;;  %vm129_vm0 = vcmask 261120   ;;  %s1292_s0 = inlined_call_operand.vmem [shape: bf16[32,256], index: 0, kind: input, shape index: {}]   ;;  %s1293_s1 = inlined_call_operand.vmem [shape: bf16[32,256], index: 1, kind: input, shape index: {}]   ;;  %s1294_s2 = inlined_call_operand.vmem [shape: bf16[128,32], index: 2, kind: input, shape index: {}]   ;;  %s1295_s3 = inlined_call_operand.vmem [shape: bf16[128,32], index: 3, kind: input, shape index: {}]   ;;  %s1296_s4 = inlined_call_operand.vmem [shape: f32[128,1], index: 4, kind: input, shape index: {}]   ;;  %s1297_s5 = inlined_call_operand.vmem [shape: f32[128,1], index: 5, kind: input, shape index: {}]   ;;  %s1298_s6 = inlined_call_operand.<no memory space> [shape: f32[1,1], index: 6, kind: input, shape index: {}]   ;;  %s1299_s7 = inlined_call_operand.hbm [shape: f32[1,256], index: 7, kind: output, shape index: {}]  }
   0x1   :  { %v912_v0 = vld [vmem:[%s1293_s1 + $0x4] ss:$8 sps:$4 sm:$0xff]   ;;  %186 = vmatprep.mubr.bf16.mxu1 %v964_v2  ;;  %383 = vmatprep.mubr.bf16.mxu0 %v964_v2  ;;  %v916_v3 = vld [vmem:[%s1293_s1] ss:$8 sps:$4 sm:$0xff]   ;;  %v918_v5 = vld [vmem:[%s1293_s1 + $0x14] ss:$8 sps:$4 sm:$0xff]  }
   0x2   :  { %v914_v1 = vld [vmem:[%s1292_s0 + $0x4] ss:$8 sps:$4 sm:$0xff]   ;;  %154 = vmatprep.subr.bf16.mxu1 %v912_v0  ;;  %v917_v4 = vld [vmem:[%s1292_s0] ss:$8 sps:$4 sm:$0xff]   ;;  %910 = vset.pattern.permute.xlu0 %v964_v2  ;;  %v920_v6 = vld [vmem:[%s1292_s0 + $0x14] ss:$8 sps:$4 sm:$0xff]  }
   0x3   :  { %351 = vmatprep.subr.bf16.mxu0 %v914_v1  ;;  %911 = vset.pattern.permute.xlu1 %v964_v2  ;;  %v922_v7 = vld [vmem:[%s1293_s1 + $0x10] ss:$8 sps:$4 sm:$0xff]   ;;  %v924_v9 = vld [vmem:[%s1295_s3] sm:$0xff]   ;;  %v926_v11 = vld [vmem:[%s1295_s3 + $0x8] sm:$0xff]  }
   0x4   :  { %155 = vmatpush1.bf16.msra.mxu1 %v916_v3  ;;  %352 = vmatpush1.bf16.msra.mxu0 %v917_v4  ;;  %v923_v8 = vld [vmem:[%s1292_s0 + $0x10] ss:$8 sps:$4 sm:$0xff]   ;;  %v925_v10 = vld [vmem:[%s1294_s2] sm:$0xff]   ;;  %v927_v14 = vld [vmem:[%s1294_s2 + $0x8] sm:$0xff]  }
   0x5   :  { %156 = vmatprep.subr.bf16.mxu1 %v918_v5  ;;  %353 = vmatprep.subr.bf16.mxu0 %v920_v6  ;;  %v464_v12 = vld [vmem:[%s1296_s4] sm:$0xff]  ;;  %v466_v13 = vld [vmem:[%s1296_s4 + $0x10] sm:$0xff]  ;;  %v465_v15 = vld [vmem:[%s1296_s4 + $0x8] sm:$0xff] }
   0x6   :  { %482 = vperm.xlu0 %910, %v464_v12   ;;  %492 = vperm.xlu1 %911, %v466_v13   ;;  %v467_v16 = vld [vmem:[%s1296_s4 + $0x18] sm:$0xff]  ;;  %v624_v17 = vld [vmem:[%s1297_s5] sm:$0xff]  ;;  %v625_v18 = vld [vmem:[%s1297_s5 + $0x8] sm:$0xff] }
   0x7   :  { %v928_v19 = vld [vmem:[%s1295_s3 + $0x10] sm:$0xff]   ;;  %v468_v21 = vld [vmem:[%s1296_s4 + $0x20] sm:$0xff]  ;;  %v469_v23 = vld [vmem:[%s1296_s4 + $0x28] sm:$0xff] }
   0x8   :  { %157 = vmatpush1.bf16.msra.mxu1 %v922_v7  ;;  %354 = vmatpush1.bf16.msra.mxu0 %v923_v8  ;;  %v929_v20 = vld [vmem:[%s1294_s2 + $0x10] sm:$0xff]   ;;  %v627_v24 = vld [vmem:[%s1297_s5 + $0x18] sm:$0xff]  ;;  %v628_v28 = vld [vmem:[%s1297_s5 + $0x20] sm:$0xff] }
   0x9   :  { %v626_v22 = vld [vmem:[%s1297_s5 + $0x10] sm:$0xff]  ;;  %v930_v25 = vld [vmem:[%s1295_s3 + $0x18] sm:$0xff]  }
   0xa   :  { %487 = vperm.xlu0 %910, %v465_v15   ;;  %497 = vperm.xlu1 %911, %v467_v16   ;;  %v931_v26 = vld [vmem:[%s1294_s2 + $0x18] sm:$0xff]   ;;  %v470_v27 = vld [vmem:[%s1296_s4 + $0x30] sm:$0xff] }
   0xb   :  { %847 = vmatmul.mubr.msk.bf16.vlgmr.msra.gmra.mrb[0].mxu1 %vm129_vm0, %v924_v9  ;;  %867 = vmatmul.mubr.msk.bf16.vlgmr.msra.gmra.mrb[0].mxu0 %vm129_vm0, %v925_v10 }
   0xc   :  { %196 = vmatprep.mubr.bf16.mxu1 %v964_v2  ;;  %393 = vmatprep.mubr.bf16.mxu0 %v964_v2 }
   0xe   :  { %642 = vperm.xlu0 %910, %v624_v17   ;;  %647 = vperm.xlu1 %911, %v625_v18  }
  0x12   :  { %502 = vperm.xlu0 %910, %v468_v21   ;;  %652 = vperm.xlu1 %911, %v626_v22  }
  0x13   :  { %848 = vmatmul.mubr.msk.bf16.gmra.mrb[4].mxu1 %vm129_vm0, %v926_v11  ;;  %868 = vmatmul.mubr.msk.bf16.gmra.mrb[4].mxu0 %vm129_vm0, %v927_v14 }
  0x14   :  { %206 = vmatprep.mubr.bf16.mxu1 %v964_v2  ;;  %403 = vmatprep.mubr.bf16.mxu0 %v964_v2 }
  0x16   :  { %507 = vperm.xlu0 %910, %v469_v23   ;;  %657 = vperm.xlu1 %911, %v627_v24  }
  0x1b   :  { %849 = vmatmul.mubr.msk.bf16.gmra.mrb[8].mxu1 %vm129_vm0, %v928_v19  ;;  %869 = vmatmul.mubr.msk.bf16.gmra.mrb[8].mxu0 %vm129_vm0, %v929_v20 }
  0x1c   :  { %216 = vmatprep.mubr.bf16.mxu1 %v964_v2  ;;  %413 = vmatprep.mubr.bf16.mxu0 %v964_v2 }
  0x1d   :  { %13 = vsyncpa [#allocation4], 0  ;;  %512 = vperm.xlu0 %910, %v470_v27   ;;  %662 = vperm.xlu1 %911, %v628_v28   ;;  %v471_v29 = vld [vmem:[%s1296_s4 + $0x38] sm:$0xff]  ;;  %v629_v30 = vld [vmem:[%s1297_s5 + $0x28] sm:$0xff]  ;;  %s966_s11 = smov [#allocation3]  }
  0x1e   :  { %v932_v31 = vld [vmem:[%s1295_s3 + $0x20] sm:$0xff]   ;;  %v630_v34 = vld [vmem:[%s1297_s5 + $0x30] sm:$0xff]  ;;  %v473_v35 = vld [vmem:[%s1296_s4 + $0x48] sm:$0xff]  ;;  %s827_s12 = sshll.u32 %s966_s11, 4  ;;  %s828_s12 = int_to_ptr.vmem [resolvable:$true] %s827_s12 }
  0x1f   :  { %v933_v32 = vld [vmem:[%s1294_s2 + $0x20] sm:$0xff]   ;;  %v631_v36 = vld [vmem:[%s1297_s5 + $0x38] sm:$0xff]  ;;  %v934_v37 = vld [vmem:[%s1295_s3 + $0x28] sm:$0xff]   ;;  %s940_s13 = scalar_lea.vmem %s828_s12, 32  ;;  %p945_p1 = scmp.lt.s32.totalorder %s828_s12, %s828_s12 }
  0x20   :  { %v472_v33 = vld [vmem:[%s1296_s4 + $0x40] sm:$0xff]  ;;  %v935_v38 = vld [vmem:[%s1294_s2 + $0x28] sm:$0xff]   ;;  %v474_v39 = vld [vmem:[%s1296_s4 + $0x50] sm:$0xff]  ;;  %p941_p0 = scmp.ne.s32.totalorder %s828_s12, %s940_s13  ;;  %p946_p2 = scmp.lt.s32.totalorder %s940_s13, %s940_s13 }
  0x21   :  { %517 = vperm.xlu0 %910, %v471_v29   ;;  %667 = vperm.xlu1 %911, %v629_v30   ;;  %v632_v40 = vld [vmem:[%s1297_s5 + $0x40] sm:$0xff]  ;;  %v475_v41 = vld [vmem:[%s1296_s4 + $0x58] sm:$0xff]  ;;  %v633_v42 = vld [vmem:[%s1297_s5 + $0x48] sm:$0xff] }
  0x22   :  { %v936_v43 = vld [vmem:[%s1295_s3 + $0x30] sm:$0xff]   ;;  %v476_v45 = vld [vmem:[%s1296_s4 + $0x60] sm:$0xff]  ;;  %v477_v47 = vld [vmem:[%s1296_s4 + $0x68] sm:$0xff]  ;;  %p947_p3 = por %p946_p2, %p945_p1 }
  0x23   :  { %850 = vmatmul.mubr.msk.bf16.gmra.mrb[12].mxu1 %vm129_vm0, %v930_v25  ;;  %870 = vmatmul.mubr.msk.bf16.gmra.mrb[12].mxu0 %vm129_vm0, %v931_v26  ;;  %v937_v44 = vld [vmem:[%s1294_s2 + $0x30] sm:$0xff]   ;;  %v635_v48 = vld [vmem:[%s1297_s5 + $0x58] sm:$0xff]  ;;  %v636_v52 = vld [vmem:[%s1297_s5 + $0x60] sm:$0xff] }
  0x24   :  { %226 = vmatprep.mubr.bf16.mxu1 %v964_v2  ;;  %423 = vmatprep.mubr.bf16.mxu0 %v964_v2  ;;  %v634_v46 = vld [vmem:[%s1297_s5 + $0x50] sm:$0xff]  ;;  %v938_v49 = vld [vmem:[%s1295_s3 + $0x38] sm:$0xff]   ;;  %v637_v54 = vld [vmem:[%s1297_s5 + $0x68] sm:$0xff]  ;;  %p948_p4 = pnand %p947_p3, %p941_p0 }
  0x25   :  { %522 = vperm.xlu0 %910, %v472_v33   ;;  %672 = vperm.xlu1 %911, %v630_v34   ;;  %v939_v50 = vld [vmem:[%s1294_s2 + $0x38] sm:$0xff]   ;;  %v478_v51 = vld [vmem:[%s1296_s4 + $0x70] sm:$0xff] }
  0x26   :  { %v479_v53 = vld [vmem:[%s1296_s4 + $0x78] sm:$0xff]  ;;  %v638_v55 = vld [vmem:[%s1297_s5 + $0x70] sm:$0xff] }
  0x27   :  { %v639_v56 = vld [vmem:[%s1297_s5 + $0x78] sm:$0xff] }
  0x29   :  { %527 = vperm.xlu0 %910, %v473_v35   ;;  %677 = vperm.xlu1 %911, %v631_v36  }
  0x2b   :  { %851 = vmatmul.mubr.msk.bf16.gmra.mrb[16].mxu1 %vm129_vm0, %v932_v31  ;;  %871 = vmatmul.mubr.msk.bf16.gmra.mrb[16].mxu0 %vm129_vm0, %v933_v32 }
  0x2c   :  { %236 = vmatprep.mubr.bf16.mxu1 %v964_v2  ;;  %433 = vmatprep.mubr.bf16.mxu0 %v964_v2 }
  0x2d   :  { %532 = vperm.xlu0 %910, %v474_v39   ;;  %682 = vperm.xlu1 %911, %v632_v40  }
  0x31   :  { %537 = vperm.xlu0 %910, %v475_v41   ;;  %687 = vperm.xlu1 %911, %v633_v42  }
  0x33   :  { %852 = vmatmul.mubr.msk.bf16.gmra.mrb[20].mxu1 %vm129_vm0, %v934_v37  ;;  %872 = vmatmul.mubr.msk.bf16.gmra.mrb[20].mxu0 %vm129_vm0, %v935_v38 }
  0x34   :  { %246 = vmatprep.mubr.bf16.mxu1 %v964_v2  ;;  %443 = vmatprep.mubr.bf16.mxu0 %v964_v2 }
  0x35   :  { %542 = vperm.xlu0 %910, %v476_v45   ;;  %692 = vperm.xlu1 %911, %v634_v46  }
  0x39   :  { %547 = vperm.xlu0 %910, %v477_v47   ;;  %697 = vperm.xlu1 %911, %v635_v48  }
  0x3b   :  { %853 = vmatmul.mubr.msk.bf16.gmra.mrb[24].mxu1 %vm129_vm0, %v936_v43  ;;  %873 = vmatmul.mubr.msk.bf16.gmra.mrb[24].mxu0 %vm129_vm0, %v937_v44 }
  0x3c   :  { %256 = vmatprep.mubr.bf16.mxu1 %v964_v2  ;;  %453 = vmatprep.mubr.bf16.mxu0 %v964_v2 }
  0x3d   :  { %552 = vperm.xlu0 %910, %v478_v51   ;;  %702 = vperm.xlu1 %911, %v636_v52  }
  0x41   :  { %557 = vperm.xlu0 %910, %v479_v53   ;;  %707 = vperm.xlu1 %911, %v637_v54  }
  0x43   :  { %854 = vmatmul.mubr.msk.bf16.gmra.mrb[28].mxu1 %vm129_vm0, %v938_v49  ;;  %874 = vmatmul.mubr.msk.bf16.gmra.mrb[28].mxu0 %vm129_vm0, %v939_v50 }
  0x45   :  { %712 = vperm.xlu0 %910, %v638_v55   ;;  %717 = vperm.xlu1 %911, %v639_v56  }
  0x85   :  { %v483_v57 = vpop.permute.xlu0 %482  ;;  %v493_v58 = vpop.permute.xlu1 %492 }
  0x89   :  { %v488_v59 = vpop.permute.xlu0 %487  ;;  %v498_v60 = vpop.permute.xlu1 %497 }
  0x8d   :  { %v643_v61 = vpop.permute.xlu0 %642  ;;  %v648_v62 = vpop.permute.xlu1 %647 }
  0x91   :  { %v1209_v63 = vpop.permute.xlu0 %502  ;;  %v653_v0 = vpop.permute.xlu1 %652 }
  0x95   :  { %v1211_v1 = vpop.permute.xlu0 %507  ;;  %v1213_v2 = vpop.permute.xlu1 %657 }
  0x9c   :  { %v1215_v3 = vpop.permute.xlu0 %512  ;;  %v1217_v4 = vpop.permute.xlu1 %662 }
  0xa0   :  { %v1219_v5 = vpop.permute.xlu0 %517  ;;  %v1221_v6 = vpop.permute.xlu1 %667 }
  0xa4   :  { %v1223_v7 = vpop.permute.xlu0 %522  ;;  %v1225_v8 = vpop.permute.xlu1 %672 }
  0xa8   :  { %v1227_v27 = vpop.permute.xlu0 %527  ;;  %v1229_v28 = vpop.permute.xlu1 %677 }
  0xac   :  { %v1231_v55 = vpop.permute.xlu0 %532  ;;  %v1233_v56 = vpop.permute.xlu1 %682 }
  0xde   :  { %v188_v9 = vpop.f32.mrb[0].mxu1  ;;  %v385_v10 = vpop.f32.mrb[0].mxu0 }
  0xdf   :  { %v386_v11 = vadd.f32 %v385_v10, %v188_v9  ;;  %v190_v12 = vpop.f32.mrb[1].mxu1  ;;  %v387_v13 = vpop.f32.mrb[1].mxu0 }
  0xe0   :  { %v388_v14 = vadd.f32 %v387_v13, %v190_v12  ;;  %v192_v15 = vpop.f32.mrb[2].mxu1  ;;  %v389_v16 = vpop.f32.mrb[2].mxu0 }
  0xe1   :  { %v560_v17 = vadd.f32 %v483_v57, %v386_v11  ;;  %v390_v18 = vadd.f32 %v389_v16, %v192_v15  ;;  %v194_v19 = vpop.f32.mrb[3].mxu1  ;;  %v391_v20 = vpop.f32.mrb[3].mxu0 }
  0xe2   :  { %v561_v21 = vadd.f32 %v483_v57, %v388_v14  ;;  %v392_v22 = vadd.f32 %v391_v20, %v194_v19 }
  0xe3   :  { %v592_v23 = vmax.f32 %v560_v17, 0.0  ;;  %v562_v24 = vadd.f32 %v488_v59, %v390_v18 }
  0xe4   :  { %v593_v25 = vmax.f32 %v561_v21, 0.0  ;;  %v563_v26 = vadd.f32 %v488_v59, %v392_v22 }
  0xe5   :  { %v594_v29 = vmax.f32 %v562_v24, 0.0  ;;  %v720_v33 = vmul.f32 %v643_v61, %v592_v23 }
  0xe6   :  { %v595_v30 = vmax.f32 %v563_v26, 0.0  ;;  %v198_v31 = vpop.f32.mrb[4].mxu1  ;;  %v395_v32 = vpop.f32.mrb[4].mxu0  ;;  %v721_v38 = vmul.f32 %v643_v61, %v593_v25 }
  0xe7   :  { %v722_v34 = vmul.f32 %v648_v62, %v594_v29  ;;  %v396_v35 = vadd.f32 %v395_v32, %v198_v31  ;;  %v200_v36 = vpop.f32.mrb[5].mxu1  ;;  %v397_v37 = vpop.f32.mrb[5].mxu0 }
  0xe8   :  { %v723_v39 = vmul.f32 %v648_v62, %v595_v30  ;;  %v398_v40 = vadd.f32 %v397_v37, %v200_v36  ;;  %v202_v41 = vpop.f32.mrb[6].mxu1  ;;  %v399_v42 = vpop.f32.mrb[6].mxu0 }
  0xe9   :  { %v752_v43 = vadd.f32 %v722_v34, %v720_v33  ;;  %v564_v44 = vadd.f32 %v493_v58, %v396_v35  ;;  %v400_v45 = vadd.f32 %v399_v42, %v202_v41  ;;  %v204_v46 = vpop.f32.mrb[7].mxu1  ;;  %v401_v47 = vpop.f32.mrb[7].mxu0 }
  0xea   :  { %v773_v48 = vadd.f32 %v723_v39, %v721_v38  ;;  %v565_v49 = vadd.f32 %v493_v58, %v398_v40  ;;  %v402_v50 = vadd.f32 %v401_v47, %v204_v46  ;;  %v1243_v32 = vpop.permute.xlu1 %687 }
  0xeb   :  { %v596_v51 = vmax.f32 %v564_v44, 0.0  ;;  %v566_v52 = vadd.f32 %v498_v60, %v400_v45 }
  0xec   :  { %v597_v53 = vmax.f32 %v565_v49, 0.0  ;;  %v567_v54 = vadd.f32 %v498_v60, %v402_v50 }
  0xed   :  { %v724_v57 = vmul.f32 %v653_v0, %v596_v51  ;;  %v598_v59 = vmax.f32 %v566_v52, 0.0 }
  0xee   :  { %v725_v61 = vmul.f32 %v653_v0, %v597_v53  ;;  %v599_v62 = vmax.f32 %v567_v54, 0.0  ;;  %v208_v9 = vpop.f32.mrb[8].mxu1  ;;  %v405_v10 = vpop.f32.mrb[8].mxu0 }
  0xef   :  { %v753_v11 = vadd.f32 %v752_v43, %v724_v57  ;;  %v726_v12 = vmul.f32 %v1213_v2, %v598_v59  ;;  %v406_v13 = vadd.f32 %v405_v10, %v208_v9  ;;  %v210_v58 = vpop.f32.mrb[9].mxu1  ;;  %v407_v14 = vpop.f32.mrb[9].mxu0 }
  0xf0   :  { %v774_v15 = vadd.f32 %v773_v48, %v725_v61  ;;  %v727_v16 = vmul.f32 %v1213_v2, %v599_v62  ;;  %v408_v60 = vadd.f32 %v407_v14, %v210_v58  ;;  %v212_v17 = vpop.f32.mrb[10].mxu1  ;;  %v409_v18 = vpop.f32.mrb[10].mxu0 }
  0xf1   :  { %v754_v19 = vadd.f32 %v753_v11, %v726_v12  ;;  %v568_v20 = vadd.f32 %v1209_v63, %v406_v13  ;;  %v410_v21 = vadd.f32 %v409_v18, %v212_v17  ;;  %v214_v0 = vpop.f32.mrb[11].mxu1  ;;  %v411_v22 = vpop.f32.mrb[11].mxu0 }
  0xf2   :  { %v775_v23 = vadd.f32 %v774_v15, %v727_v16  ;;  %v569_v24 = vadd.f32 %v1209_v63, %v408_v60  ;;  %v412_v25 = vadd.f32 %v411_v22, %v214_v0  ;;  %v1241_v2 = vpop.permute.xlu0 %537  ;;  %v1255_v62 = vpop.permute.xlu1 %692 }
  0xf3   :  { %v600_v26 = vmax.f32 %v568_v20, 0.0  ;;  %v570_v29 = vadd.f32 %v1211_v1, %v410_v21 }
  0xf4   :  { %v601_v30 = vmax.f32 %v569_v24, 0.0  ;;  %v571_v31 = vadd.f32 %v1211_v1, %v412_v25 }
  0xf5   :  { %v728_v33 = vmul.f32 %v1217_v4, %v600_v26  ;;  %v602_v34 = vmax.f32 %v570_v29, 0.0 }
  0xf6   :  { %v729_v35 = vmul.f32 %v1217_v4, %v601_v30  ;;  %v603_v36 = vmax.f32 %v571_v31, 0.0  ;;  %v218_v37 = vpop.f32.mrb[12].mxu1  ;;  %v415_v38 = vpop.f32.mrb[12].mxu0 }
  0xf7   :  { %v755_v63 = vadd.f32 %v754_v19, %v728_v33  ;;  %v730_v39 = vmul.f32 %v1221_v6, %v602_v34  ;;  %v416_v40 = vadd.f32 %v415_v38, %v218_v37  ;;  %v220_v41 = vpop.f32.mrb[13].mxu1  ;;  %v417_v42 = vpop.f32.mrb[13].mxu0 }
  0xf8   :  { %v776_v43 = vadd.f32 %v775_v23, %v729_v35  ;;  %v731_v1 = vmul.f32 %v1221_v6, %v603_v36  ;;  %v418_v44 = vadd.f32 %v417_v42, %v220_v41  ;;  %v222_v45 = vpop.f32.mrb[14].mxu1  ;;  %v419_v46 = vpop.f32.mrb[14].mxu0 }
  0xf9   :  { %v756_v47 = vadd.f32 %v755_v63, %v730_v39  ;;  %v572_v48 = vadd.f32 %v1215_v3, %v416_v40  ;;  %v420_v49 = vadd.f32 %v419_v46, %v222_v45  ;;  %v224_v4 = vpop.f32.mrb[15].mxu1  ;;  %v421_v50 = vpop.f32.mrb[15].mxu0 }
  0xfa   :  { %v777_v51 = vadd.f32 %v776_v43, %v731_v1  ;;  %v573_v52 = vadd.f32 %v1215_v3, %v418_v44  ;;  %v422_v53 = vadd.f32 %v421_v50, %v224_v4  ;;  %v1253_v6 = vpop.permute.xlu0 %542  ;;  %v698_v34 = vpop.permute.xlu1 %697 }
  0xfb   :  { %v604_v54 = vmax.f32 %v572_v48, 0.0  ;;  %v574_v57 = vadd.f32 %v1219_v5, %v420_v49 }
  0xfc   :  { %v605_v59 = vmax.f32 %v573_v52, 0.0  ;;  %v575_v61 = vadd.f32 %v1219_v5, %v422_v53 }
  0xfd   :  { %v732_v9 = vmul.f32 %v1225_v8, %v604_v54  ;;  %v606_v10 = vmax.f32 %v574_v57, 0.0 }
  0xfe   :  { %v733_v11 = vmul.f32 %v1225_v8, %v605_v59  ;;  %v607_v12 = vmax.f32 %v575_v61, 0.0  ;;  %v228_v13 = vpop.f32.mrb[16].mxu1  ;;  %v425_v58 = vpop.f32.mrb[16].mxu0 }
  0xff   :  { %v757_v3 = vadd.f32 %v756_v47, %v732_v9  ;;  %v734_v14 = vmul.f32 %v1229_v28, %v606_v10  ;;  %v426_v15 = vadd.f32 %v425_v58, %v228_v13  ;;  %v230_v16 = vpop.f32.mrb[17].mxu1  ;;  %v427_v60 = vpop.f32.mrb[17].mxu0 }
 0x100   :  { %v778_v17 = vadd.f32 %v777_v51, %v733_v11  ;;  %v735_v5 = vmul.f32 %v1229_v28, %v607_v12  ;;  %v428_v18 = vadd.f32 %v427_v60, %v230_v16  ;;  %v232_v19 = vpop.f32.mrb[18].mxu1  ;;  %v429_v20 = vpop.f32.mrb[18].mxu0 }
 0x101   :  { %v758_v21 = vadd.f32 %v757_v3, %v734_v14  ;;  %v576_v0 = vadd.f32 %v1223_v7, %v426_v15  ;;  %v430_v22 = vadd.f32 %v429_v20, %v232_v19  ;;  %v234_v8 = vpop.f32.mrb[19].mxu1  ;;  %v431_v23 = vpop.f32.mrb[19].mxu0 }
 0x102   :  { %v779_v24 = vadd.f32 %v778_v17, %v735_v5  ;;  %v577_v25 = vadd.f32 %v1223_v7, %v428_v18  ;;  %v432_v26 = vadd.f32 %v431_v23, %v234_v8  ;;  %v548_v28 = vpop.permute.xlu0 %547  ;;  %v703_v61 = vpop.permute.xlu1 %702 }
 0x103   :  { %v608_v29 = vmax.f32 %v576_v0, 0.0  ;;  %v578_v30 = vadd.f32 %v1227_v27, %v430_v22 }
 0x104   :  { %v609_v31 = vmax.f32 %v577_v25, 0.0  ;;  %v579_v33 = vadd.f32 %v1227_v27, %v432_v26 }
 0x105   :  { %v736_v35 = vmul.f32 %v1233_v56, %v608_v29  ;;  %v610_v36 = vmax.f32 %v578_v30, 0.0 }
 0x106   :  { %v737_v37 = vmul.f32 %v1233_v56, %v609_v31  ;;  %v611_v38 = vmax.f32 %v579_v33, 0.0  ;;  %v238_v63 = vpop.f32.mrb[20].mxu1  ;;  %v435_v39 = vpop.f32.mrb[20].mxu0 }
 0x107   :  { %v759_v40 = vadd.f32 %v758_v21, %v736_v35  ;;  %v738_v7 = vmul.f32 %v1243_v32, %v610_v36  ;;  %v436_v41 = vadd.f32 %v435_v39, %v238_v63  ;;  %v240_v42 = vpop.f32.mrb[21].mxu1  ;;  %v437_v43 = vpop.f32.mrb[21].mxu0 }
 0x108   :  { %v780_v1 = vadd.f32 %v779_v24, %v737_v37  ;;  %v739_v44 = vmul.f32 %v1243_v32, %v611_v38  ;;  %v438_v27 = vadd.f32 %v437_v43, %v240_v42  ;;  %v242_v45 = vpop.f32.mrb[22].mxu1  ;;  %v439_v46 = vpop.f32.mrb[22].mxu0 }
 0x109   :  { %v760_v47 = vadd.f32 %v759_v40, %v738_v7  ;;  %v580_v48 = vadd.f32 %v1231_v55, %v436_v41  ;;  %v440_v49 = vadd.f32 %v439_v46, %v242_v45  ;;  %v244_v56 = vpop.f32.mrb[23].mxu1  ;;  %v441_v4 = vpop.f32.mrb[23].mxu0 }
 0x10a   :  { %v781_v50 = vadd.f32 %v780_v1, %v739_v44  ;;  %v581_v51 = vadd.f32 %v1231_v55, %v438_v27  ;;  %v442_v52 = vadd.f32 %v441_v4, %v244_v56  ;;  %v553_v32 = vpop.permute.xlu0 %552  ;;  %v708_v31 = vpop.permute.xlu1 %707 }
 0x10b   :  { %v612_v53 = vmax.f32 %v580_v48, 0.0  ;;  %v582_v54 = vadd.f32 %v1241_v2, %v440_v49 }
 0x10c   :  { %v613_v57 = vmax.f32 %v581_v51, 0.0  ;;  %v583_v59 = vadd.f32 %v1241_v2, %v442_v52 }
 0x10d   :  { %v740_v9 = vmul.f32 %v1255_v62, %v612_v53  ;;  %v614_v10 = vmax.f32 %v582_v54, 0.0 }
 0x10e   :  { %v741_v11 = vmul.f32 %v1255_v62, %v613_v57  ;;  %v615_v12 = vmax.f32 %v583_v59, 0.0  ;;  %v248_v13 = vpop.f32.mrb[24].mxu1  ;;  %v445_v58 = vpop.f32.mrb[24].mxu0 }
 0x10f   :  { %v761_v3 = vadd.f32 %v760_v47, %v740_v9  ;;  %v742_v14 = vmul.f32 %v698_v34, %v614_v10  ;;  %v446_v55 = vadd.f32 %v445_v58, %v248_v13  ;;  %v250_v15 = vpop.f32.mrb[25].mxu1  ;;  %v447_v16 = vpop.f32.mrb[25].mxu0 }
 0x110   :  { %v782_v60 = vadd.f32 %v781_v50, %v741_v11  ;;  %v743_v17 = vmul.f32 %v698_v34, %v615_v12  ;;  %v448_v5 = vadd.f32 %v447_v16, %v250_v15  ;;  %v252_v18 = vpop.f32.mrb[26].mxu1  ;;  %v449_v2 = vpop.f32.mrb[26].mxu0 }
 0x111   :  { %v762_v19 = vadd.f32 %v761_v3, %v742_v14  ;;  %v584_v20 = vadd.f32 %v1253_v6, %v446_v55  ;;  %v450_v21 = vadd.f32 %v449_v2, %v252_v18  ;;  %v254_v0 = vpop.f32.mrb[27].mxu1  ;;  %v451_v22 = vpop.f32.mrb[27].mxu0  ;;  %v804_v18 = vlaneseq }
 0x112   :  { %v783_v62 = vadd.f32 %v782_v60, %v743_v17  ;;  %v585_v8 = vadd.f32 %v1253_v6, %v448_v5  ;;  %v452_v23 = vadd.f32 %v451_v22, %v254_v0  ;;  %v558_v30 = vpop.permute.xlu0 %557  ;;  %v718_v59 = vpop.permute.xlu1 %717  ;;  %v965_v17 = vmov 1966171168  }
 0x113   :  { %v616_v24 = vmax.f32 %v584_v20, 0.0  ;;  %v586_v25 = vadd.f32 %v548_v28, %v450_v21  ;;  %v802_v5 = vunpack.c.l.s4 %v965_v17  ;;  %v795_v0 = vstv %s1298_s6 }
 0x114   :  { %v617_v26 = vmax.f32 %v585_v8, 0.0  ;;  %v587_v29 = vadd.f32 %v548_v28, %v452_v23  ;;  %vm818_vm1 = vcmp.lt.s32.totalorder %v804_v18, 256 }
 0x115   :  { %v744_v33 = vmul.f32 %v703_v61, %v616_v24  ;;  %v618_v34 = vmax.f32 %v586_v25, 0.0  ;;  %v803_v22 = vunpack.c.0.s8 %v802_v5 }
 0x116   :  { %v745_v35 = vmul.f32 %v703_v61, %v617_v26  ;;  %v619_v36 = vmax.f32 %v587_v29, 0.0  ;;  %v258_v37 = vpop.f32.mrb[28].mxu1  ;;  %v455_v38 = vpop.f32.mrb[28].mxu0 }
 0x117   :  { %v763_v63 = vadd.f32 %v762_v19, %v744_v33  ;;  %v746_v39 = vmul.f32 %v708_v31, %v618_v34  ;;  %v456_v40 = vadd.f32 %v455_v38, %v258_v37  ;;  %v260_v7 = vpop.f32.mrb[29].mxu1  ;;  %v457_v41 = vpop.f32.mrb[29].mxu0 }
 0x118   :  { %v784_v42 = vadd.f32 %v783_v62, %v745_v35  ;;  %v747_v6 = vmul.f32 %v708_v31, %v619_v36  ;;  %v458_v43 = vadd.f32 %v457_v41, %v260_v7  ;;  %v262_v1 = vpop.f32.mrb[30].mxu1  ;;  %v459_v44 = vpop.f32.mrb[30].mxu0  ;;  %v805_v62 = vshrl.u32 %v804_v18, 7 }
 0x119   :  { %v764_v27 = vadd.f32 %v763_v63, %v746_v39  ;;  %v588_v28 = vadd.f32 %v553_v32, %v456_v40  ;;  %v460_v45 = vadd.f32 %v459_v44, %v262_v1  ;;  %v264_v46 = vpop.f32.mrb[31].mxu1  ;;  %v461_v47 = vpop.f32.mrb[31].mxu0 }
 0x11a   :  { %v785_v48 = vadd.f32 %v784_v42, %v747_v6  ;;  %v589_v49 = vadd.f32 %v553_v32, %v458_v43  ;;  %v462_v56 = vadd.f32 %v461_v47, %v264_v46  ;;  %v713_v51 = vpop.permute.xlu0 %712  ;;  %v806_v26 = vsub.s32 %v803_v22, %v805_v62 }
 0x11b   :  { %v620_v4 = vmax.f32 %v588_v28, 0.0  ;;  %v590_v50 = vadd.f32 %v558_v30, %v460_v45 }
 0x11c   :  { %v621_v52 = vmax.f32 %v589_v49, 0.0  ;;  %v591_v53 = vadd.f32 %v558_v30, %v462_v56 }
 0x11d   :  { %v748_v54 = vmul.f32 %v713_v51, %v620_v4  ;;  %v622_v57 = vmax.f32 %v590_v50, 0.0 }
 0x11e   :  { %v749_v61 = vmul.f32 %v713_v51, %v621_v52  ;;  %v623_v9 = vmax.f32 %v591_v53, 0.0 }
 0x11f   :  { %v765_v10 = vadd.f32 %v764_v27, %v748_v54  ;;  %v750_v11 = vmul.f32 %v718_v59, %v622_v57 }
 0x120   :  { %v786_v12 = vadd.f32 %v785_v48, %v749_v61  ;;  %v751_v13 = vmul.f32 %v718_v59, %v623_v9 }
 0x121   :  { %v766_v58 = vadd.f32 %v765_v10, %v750_v11 }
 0x122   :  { %v787_v3 = vadd.f32 %v786_v12, %v751_v13 }
 0x123   :  { %v767_v14 = vrot.slane %v766_v58, 4 }
 0x124   :  { %v788_v55 = vrot.slane %v787_v3, 4 }
 0x125   :  { %v768_v32 = vadd.f32 %v767_v14, %v766_v58 }
 0x126   :  { %v789_v15 = vadd.f32 %v788_v55, %v787_v3 }
 0x127   :  { %v769_v16 = vrot.slane %v768_v32, 2 }
 0x128   :  { %v790_v60 = vrot.slane %v789_v15, 2 }
 0x129   :  { %v770_v2 = vadd.f32 %v769_v16, %v768_v32 }
 0x12a   :  { %v791_v19 = vadd.f32 %v790_v60, %v789_v15 }
 0x12b   :  { %v771_v20 = vrot.slane %v770_v2, 1 }
 0x12c   :  { %v792_v21 = vrot.slane %v791_v19, 1 }
 0x12d   :  { %v772_v8 = vadd.f32 %v771_v20, %v770_v2 }
 0x12e   :  { %v793_v23 = vadd.f32 %v792_v21, %v791_v19 }
 0x12f   :  { %v796_v24 = vadd.f32 %v795_v0, %v772_v8 }
 0x130   :  { %v797_v25 = vadd.f32 %v795_v0, %v793_v23 }
 0x132   :  { %v800_v29 = vcombine.low %v796_v24, %v797_v25 }
 0x134   :  { %v807_v30 = vrot.slane %v800_v29, %v806_v26 }
 0x136   :  { %v814_v31 = vrot.slane %v807_v30, %v806_v26 }
 0x138   :  { %820 = vst.msk [vmem:[#allocation3] sm:$0x3] %vm818_vm1, %v814_v31 }
 0x139   :  { %951 = shalt.err (!%p948_p4)
}
 0x13a   :  { %s952_s15 = scalar_lea.hbm %s1299_s7, 32 }
 0x13b   :  { %p953_p5 = scmp.ne.s32.totalorder %s1299_s7, %s952_s15  ;;  %p956_p6 = scmp.lt.u32.totalorder %s952_s15, %s1299_s7 }
 0x13d   :  { %p958_p7 = pnand %p956_p6, %p953_p5 }
 0x13f   :  { %961 = shalt.err (!%p958_p7)
}
 0x140   :  { %830 = dma.vmem_to_hbm [thread:$0]  %s828_s12, 32, %s1299_s7, [#allocation4]  }
 0x141   :  { %962 = dma.done.wait [#allocation4], 32  }
 0x142   :  { %963 = vsyncadd [#allocation4], 4294967264 }
 0x143   :  { %834 = vsyncpa [#allocation4], 1 }

</bundles_post_ra>
